<compile_context>
chip_gen: v7x
topology: tpu7x:2x2x1
jax: 0.10.0
libtpu: 0.0.40
codegen_flags: <defaults>
</compile_context>

<pallas_src>
import math
import functools

import jax
import jax.numpy as jnp
from jax import lax
from jax.experimental import pallas as pl
from jax.experimental.pallas import tpu as pltpu


# ----------------------------------------------------------------------------
# Parameter / buffer construction (plain JAX "glue", deterministic)
# ----------------------------------------------------------------------------
def make_pe_table(d_model: int, max_len: int = 5000) -> jnp.ndarray:
    """(max_len, 1, d_model) sinusoidal table, exactly like the module __init__."""
    position = jnp.arange(max_len, dtype=jnp.float32)[:, None]          # (L, 1)
    div_term = jnp.exp(
        jnp.arange(0, d_model, 2, dtype=jnp.float32)
        * (-math.log(10000.0) / d_model)
    )                                                                    # (ceil(D/2),)
    angles = position * div_term                                         # (L, ceil(D/2))
    pe = jnp.zeros((max_len, d_model), dtype=jnp.float32)
    pe = pe.at[:, 0::2].set(jnp.sin(angles))
    pe = pe.at[:, 1::2].set(jnp.cos(angles)[:, : d_model // 2])
    return pe[:, None, :]                                                # (L, 1, D)


# ----------------------------------------------------------------------------
# Small helpers
# ----------------------------------------------------------------------------
def _round_up(v: int, m: int) -> int:
    return (v + m - 1) // m * m


def _vmem_capacity_bytes(default: int = 64 * 1024 * 1024) -> int:
    try:
        info = pltpu.get_tpu_info()
        cap = getattr(info, "vmem_capacity_bytes", None)
        if cap:
            return int(cap)
    except Exception:
        pass
    return default


def _expand_pe(pe, batch: int, flat: bool):
    """pe: (TS, D) f32 -> something that adds against the x block."""
    if not flat:
        return pe[:, None, :]                     # broadcasts against (TS, B, D)
    if batch == 1:
        return pe
    ts, d = pe.shape
    pe3 = jnp.broadcast_to(pe[:, None, :], (ts, batch, d))
    return pe3.reshape(ts * batch, d)             # row r -> pe[r // batch]


# ----------------------------------------------------------------------------
# Pallas kernels
# ----------------------------------------------------------------------------
def _pe_add_kernel(x_ref, pe_ref, o_ref, *, batch, flat):
    pe = _expand_pe(pe_ref[...], batch, flat)                    # f32
    o_ref[...] = (x_ref[...].astype(jnp.float32) + pe).astype(o_ref.dtype)


def _pe_add_dropout_kernel(seed_ref, x_ref, pe_ref, o_ref, *,
                           batch, flat, threshold31, inv_keep):
    # Inverted dropout with a counter-based hash PRNG (pure jnp integer ops:
    # lowers on TPU VPU and in interpret mode; no pltpu.prng_* needed).
    pe = _expand_pe(pe_ref[...], batch, flat)
    val = x_ref[...].astype(jnp.float32) + pe

    shape = val.shape
    block_elems = 1
    for s in shape:
        block_elems *= s

    # Global element id (unique across the whole array: consecutive tiles hold
    # consecutive element ranges because only the leading dim is tiled).
    local = None
    stride = 1
    for axis in range(len(shape) - 1, -1, -1):
        io = lax.broadcasted_iota(jnp.int32, shape, axis)
        term = io * jnp.int32(stride)
        local = term if local is None else local + term
        stride *= shape[axis]
    base = pl.program_id(0) * jnp.int32(block_elems)
    gid = local + base

    # murmur3-style finalizer over (gid, seed) -> uniform 32-bit hash.
    h = gid.astype(jnp.uint32) * jnp.uint32(0x9E3779B1)
    h = h + seed_ref[0].astype(jnp.uint32) * jnp.uint32(0x85EBCA77)
    h = h ^ (h >> 16)
    h = h * jnp.uint32(0x85EBCA6B)
    h = h ^ (h >> 13)
    h = h * jnp.uint32(0xC2B2AE35)
    h = h ^ (h >> 16)

    r31 = (h >> 1).astype(jnp.int32)            # uniform in [0, 2^31), exact cast
    keep = r31 >= jnp.int32(threshold31)        # P(keep) = 1 - p
    o_ref[...] = jnp.where(keep, val * jnp.float32(inv_keep),
                           jnp.float32(0.0)).astype(o_ref.dtype)


# ----------------------------------------------------------------------------
# Wrapper
# ----------------------------------------------------------------------------
def positional_encoding(x, pe_table, *, p: float = 0.1, training: bool = False,
                        seed: int = 0, donate_x: bool = False, seq_tile=None):
    """x: (S, B, D); pe_table: (max_len, 1, D) or (max_len, D). Returns (S, B, D)."""
    assert 0.0 <= p < 1.0, "dropout p must satisfy 0 <= p < 1"
    S, B, D = x.shape

    pe2d = pe_table[:, 0, :] if pe_table.ndim == 3 else pe_table     # (max_len, D)
    assert pe2d.shape[0] >= S and pe2d.shape[1] == D
    # Keep PE in f32: add in f32, cast only at the store (memory-bound anyway).
    pe2d = pe2d[:S].astype(jnp.float32)                              # (S, D)

    itemsize = jnp.dtype(x.dtype).itemsize
    sub = max(8, 32 // itemsize)            # sublane multiple: 8 f32, 16 bf16, 32 int8
    flat = (B % sub) != 0                   # flatten rows when B is sublane-sparse

    # --- generation-aware tile / VMEM sizing ---------------------------------
    cap = _vmem_capacity_bytes()
    big_vmem = cap >= 96 * 1024 * 1024      # v5e / v6e (128 MiB) vs v7x (64 MiB)
    if big_vmem:
        target = (8 << 20) if training else (14 << 20)
        limit_cap = min(cap - (16 << 20), 112 << 20)
    else:
        target = (7 << 19) if training else (6 << 20)   # 3.5 MiB / 6 MiB
        limit_cap = min(cap - (12 << 20), 52 << 20)
    limit_cap = max(limit_cap, 32 << 20)

    pos_bytes = max(1, B * D * itemsize)    # bytes of x per sequence position
    if seq_tile is not None:
        ts = min(S, max(sub, (int(seq_tile) // sub) * sub))
    else:
        ts = max(sub, (target // pos_bytes) // sub * sub)
        if S >= 2 * sub:
            # keep >= 2 tiles so the single "parallel" grid axis feeds both
            # TensorCores on v7x.
            half = _round_up((S + 1) // 2, sub)
            ts = min(ts, half)
        ts = min(ts, S)
    ts = int(ts)
    num_tiles = -(-S // ts)

    # --- BlockSpecs -----------------------------------------------------------
    if flat:
        x_in = x.reshape(S * B, D)          # free reshape of contiguous HBM
        x_spec = pl.BlockSpec((ts * B, D), lambda i, *_: (i, 0))
        out_spec = pl.BlockSpec((ts * B, D), lambda i, *_: (i, 0))
        out_shape = jax.ShapeDtypeStruct((S * B, D), x.dtype)
    else:
        x_in = x
        x_spec = pl.BlockSpec((ts, B, D), lambda i, *_: (i, 0, 0))
        out_spec = pl.BlockSpec((ts, B, D), lambda i, *_: (i, 0, 0))
        out_shape = jax.ShapeDtypeStruct((S, B, D), x.dtype)
    pe_spec = pl.BlockSpec((ts, D), lambda i, *_: (i, 0))

    # --- dtype-aware VMEM budget ---------------------------------------------
    lane_d = _round_up(D, 128)
    if flat:
        rows_padded = _round_up(ts * B, sub)
    else:
        rows_padded = ts * _round_up(B, sub)
    x_tile_bytes = rows_padded * lane_d * itemsize
    pe_tile_bytes = _round_up(ts, 8) * lane_d * 4
    tmp_bytes = rows_padded * lane_d * 4                 # f32 in-kernel temporaries
    n_tmp = 4 if (training and p > 0.0) else 1
    vmem_needed = 4 * x_tile_bytes + 2 * pe_tile_bytes + n_tmp * tmp_bytes + (2 << 20)
    vmem_limit = int(min(limit_cap, max(32 << 20, vmem_needed)))

    compiler_params = pltpu.CompilerParams(
        dimension_semantics=("parallel",),   # independent tiles (v7x megacore)
        vmem_limit_bytes=vmem_limit,
    )
    # TODO(synk): pipeline_mode=pl.Buffered(3) on x_spec is a further few-% win
    # on v7x when VMEM allows; left off here to keep one well-tested path.

    if (not training) or p == 0.0:
        kern = functools.partial(_pe_add_kernel, batch=B, flat=flat)
        call_kwargs = {"input_output_aliases": {0: 0}} if donate_x else {}
        out = pl.pallas_call(
            kern,
            out_shape=out_shape,
            grid_spec=pltpu.PrefetchScalarGridSpec(
                num_scalar_prefetch=0,
                grid=(num_tiles,),
                in_specs=[x_spec, pe_spec],
                out_specs=out_spec,
            ),
            compiler_params=compiler_params,
            **call_kwargs,
        )(x_in, pe2d)
        return out.reshape(S, B, D) if flat else out

    # Training mode: stochastic inverted dropout inside the kernel.
    # NOTE: pass a fresh `seed` each training step, otherwise the mask repeats.
    # threshold31 is clamped, so p extremely close to 1 drops "almost all"
    # rather than exactly all (harmless given the p < 1 assertion above).
    threshold31 = min((1 << 31) - 1, int(round(p * float(1 << 31))))
    inv_keep = 1.0 / (1.0 - p)
    seed_arr = jnp.asarray(int(seed) & 0x7FFFFFFF, dtype=jnp.int32).reshape((1,))
    kern = functools.partial(_pe_add_dropout_kernel, batch=B, flat=flat,
                             threshold31=threshold31, inv_keep=inv_keep)
    # With num_scalar_prefetch=1 the operand order is (seed, x, pe) -> x is 1.
    call_kwargs = {"input_output_aliases": {1: 0}} if donate_x else {}
    out = pl.pallas_call(
        kern,
        out_shape=out_shape,
        grid_spec=pltpu.PrefetchScalarGridSpec(
            num_scalar_prefetch=1,
            grid=(num_tiles,),
            in_specs=[x_spec, pe_spec],
            out_specs=out_spec,
        ),
        compiler_params=compiler_params,
        **call_kwargs,
    )(seed_arr, x_in, pe2d)
    return out.reshape(S, B, D) if flat else out


# ----------------------------------------------------------------------------
# Demo / smoke test
# ----------------------------------------------------------------------------
if __name__ == "__main__":
    def ref_forward(x, pe_table):
        return x + pe_table[: x.shape[0]]

    key = jax.random.PRNGKey(0)
    k1, k2, k3 = jax.random.split(key, 3)

    # Config 1: small batch (not a sublane multiple) -> flattened-row path.
    d_model, max_len, S, B = 32, 64, 8, 2
    x = jax.random.normal(k1, (S, B, d_model), dtype=jnp.float32)
    pe = make_pe_table(d_model, max_len)

    out = jax.block_until_ready(positional_encoding(x, pe, p=0.1, training=False))
    assert out.shape == (S, B, d_model)
    assert jnp.allclose(out, ref_forward(x, pe), atol=1e-6), "eval mismatch (cfg1)"

    # Training mode: kept elements equal ref/(1-p), dropped elements are zero.
    # (Exactly-zero ref values would be misclassified; vanishingly unlikely here.)
    p = 0.25
    out_tr = jax.block_until_ready(
        positional_encoding(x, pe, p=p, training=True, seed=123))
    refv = ref_forward(x, pe)
    kept = out_tr != 0.0
    rescaled = jnp.where(kept, out_tr * (1.0 - p), refv)
    assert jnp.allclose(rescaled, refv, atol=1e-5), "train-mode scaling mismatch"
    drop_frac = 1.0 - float(jnp.mean(kept.astype(jnp.float32)))
    assert 0.05 < drop_frac < 0.5, f"suspicious drop fraction {drop_frac}"

    # Config 2: multi-tile flattened path with a partial last tile.
    S2, B2, D2 = 40, 4, 128
    x2 = jax.random.normal(k2, (S2, B2, D2), dtype=jnp.float32)
    pe2 = make_pe_table(D2, 64)
    out2 = jax.block_until_ready(positional_encoding(x2, pe2, training=False))
    assert jnp.allclose(out2, ref_forward(x2, pe2), atol=1e-6), "eval mismatch (cfg2)"

    # Config 3: batch is a sublane multiple -> (TS, B, D) path, 2 tiles.
    S3, B3, D3 = 16, 8, 128
    x3 = jax.random.normal(k3, (S3, B3, D3), dtype=jnp.float32)
    pe3 = make_pe_table(D3, 32)
    out3 = jax.block_until_ready(positional_encoding(x3, pe3, training=False))
    assert jnp.allclose(out3, ref_forward(x3, pe3), atol=1e-6), "eval mismatch (cfg3)"

    # TODO(synk): the dropout mask comes from an in-kernel counter-based hash,
    # so it will not bit-match torch.nn.Dropout's RNG stream (semantics match).

    print("KERNEL_OK")
</pallas_src>

<mosaic_0001>
module attributes {stable_mosaic.version = 11 : i64} {
  func.func @_pe_add_kernel(%arg0: i32, %arg1: memref<16x32xf32, #tpu.memory_space<vmem>>, %arg2: memref<8x32xf32, #tpu.memory_space<vmem>>, %arg3: memref<16x32xf32, #tpu.memory_space<vmem>>) attributes {dimension_semantics = [#tpu.dimension_semantics<parallel>], iteration_bounds = array<i64: 1>, scalar_prefetch = 0 : i64, scratch_operands = 0 : i64, tpu.core_type = #tpu.core_type<tc>, window_params = [{transform_indices = @transform_0, window_bounds = array<i64: 16, 32>}, {transform_indices = @transform_1, window_bounds = array<i64: 8, 32>}, {transform_indices = @transform_2, window_bounds = array<i64: 16, 32>}]} {
    %c0 = arith.constant 0 : index
    %c0_0 = arith.constant 0 : index
    %0 = vector.load %arg2[%c0, %c0_0] : memref<8x32xf32, #tpu.memory_space<vmem>>, vector<8x32xf32>
    %1 = vector.shape_cast %0 : vector<8x32xf32> to vector<8x1x32xf32>
    %2 = vector.shape_cast %1 : vector<8x1x32xf32> to vector<8x1x32xf32>
    %3 = vector.broadcast %2 : vector<8x1x32xf32> to vector<8x2x32xf32>
    %4 = vector.shape_cast %3 : vector<8x2x32xf32> to vector<16x32xf32>
    %c0_1 = arith.constant 0 : index
    %c0_2 = arith.constant 0 : index
    %5 = vector.load %arg1[%c0_1, %c0_2] : memref<16x32xf32, #tpu.memory_space<vmem>>, vector<16x32xf32>
    %6 = arith.addf %5, %4 : vector<16x32xf32>
    %c0_3 = arith.constant 0 : index
    %c0_4 = arith.constant 0 : index
    %7 = vector.load %arg3[%c0_3, %c0_4] : memref<16x32xf32, #tpu.memory_space<vmem>>, vector<16x32xf32>
    tpu.vector_store %arg3[%c0_3, %c0_4], %6 {strides = array<i32>} : memref<16x32xf32, #tpu.memory_space<vmem>>, vector<16x32xf32>,
    return
  }
  func.func @transform_0(%arg0: i32) -> (i32, i32) {
    %c0_i32 = arith.constant 0 : i32
    %c0_i32_0 = arith.constant 0 : i32
    return %arg0, %c0_i32 : i32, i32
  }
  func.func @transform_1(%arg0: i32) -> (i32, i32) {
    %c0_i32 = arith.constant 0 : i32
    %c0_i32_0 = arith.constant 0 : i32
    return %arg0, %c0_i32 : i32, i32
  }
  func.func @transform_2(%arg0: i32) -> (i32, i32) {
    %c0_i32 = arith.constant 0 : i32
    %c0_i32_0 = arith.constant 0 : i32
    return %arg0, %c0_i32 : i32, i32
  }
}

</mosaic_0001>

<bundles_post_ra>
// kernel: tpu_custom_call.1
= control target key start
LH: loop header
LB: loop body
LE: loop exit
PB: predicated region body
PF: predicated region fallthrough
CT: control target
= control target key end

     0   :  { %7 = vsyncpa [#allocation3], 0  ;;  %s325_s0 = inlined_call_operand.hbm [shape: f32[16,32], index: 0, kind: input, shape index: {}]   ;;  %s326_s1 = inlined_call_operand.hbm [shape: f32[8,32], index: 1, kind: input, shape index: {}]   ;;  %s327_s2 = inlined_call_operand.hbm [shape: f32[16,32], index: 2, kind: output, shape index: {}]  }
   0x1   :  { %8 = vsyncpa [#allocation6], 0 }
   0x2   :  { %9 = vsyncpa [#allocation4], 0  ;;  %s261_s9 = smov [#allocation2]   ;;  %s189_s13 = scalar_lea.hbm %s325_s0, 256 }
   0x3   :  { %s15_s10 = sshll.u32 %s261_s9, 4  ;;  %p190_p0 = scmp.ne.s32.totalorder %s325_s0, %s189_s13  ;;  %s16_s10 = int_to_ptr.vmem [resolvable:$true] %s15_s10 }
   0x4   :  { %p193_p1 = scmp.lt.u32.totalorder %s189_s13, %s325_s0 }
   0x6   :  { %p195_p2 = pnand %p193_p1, %p190_p0 }
   0x8   :  { %198 = shalt.err (!%p195_p2)
}
   0x9   :  { %s199_s18 = scalar_lea.vmem %s16_s10, 256  ;;  %p204_p4 = scmp.lt.s32.totalorder %s16_s10, %s16_s10 }
   0xa   :  { %p200_p3 = scmp.ne.s32.totalorder %s16_s10, %s199_s18  ;;  %p205_p5 = scmp.lt.s32.totalorder %s199_s18, %s199_s18 }
   0xc   :  { %p206_p6 = por %p205_p5, %p204_p4 }
   0xe   :  { %p207_p7 = pnand %p206_p6, %p200_p3 }
  0x10   :  { %210 = shalt.err (!%p207_p7)
}
  0x11   :  { %s262_s19 = smov 128   ;;  %s263_s20 = smov 8  }
  0x12   :  { %21 = dma.hbm_to_vmem [thread:$0]  %s325_s0, 256, %s16_s10, [#allocation3], %s262_s19, %s262_s19, %s263_s20  }
  0x13   :  { %s264_s23 = smov [#allocation5]   ;;  %s211_s27 = scalar_lea.hbm %s326_s1, 128 }
  0x14   :  { %s28_s24 = sshll.u32 %s264_s23, 4  ;;  %p212_p8 = scmp.ne.s32.totalorder %s326_s1, %s211_s27  ;;  %s29_s24 = int_to_ptr.vmem [resolvable:$true] %s28_s24 }
  0x15   :  { %p215_p9 = scmp.lt.u32.totalorder %s211_s27, %s326_s1 }
  0x17   :  { %p217_p10 = pnand %p215_p9, %p212_p8 }
  0x19   :  { %220 = shalt.err (!%p217_p10)
}
  0x1a   :  { %s221_s4 = scalar_lea.vmem %s29_s24, 128  ;;  %p226_p12 = scmp.lt.s32.totalorder %s29_s24, %s29_s24 }
  0x1b   :  { %p222_p11 = scmp.ne.s32.totalorder %s29_s24, %s221_s4  ;;  %p227_p13 = scmp.lt.s32.totalorder %s221_s4, %s221_s4 }
  0x1d   :  { %p228_p0 = por %p227_p13, %p226_p12 }
  0x1f   :  { %p229_p1 = pnand %p228_p0, %p222_p11 }
  0x21   :  { %232 = shalt.err (!%p229_p1)
}
  0x22   :  { %31 = dma.hbm_to_vmem [thread:$0]  %s326_s1, 128, %s29_s24, [#allocation6]  }
  0x23   :  { %255 = dma.done.wait [#allocation3], 256  }
  0x24   :  { %256 = vsyncadd [#allocation3], 4294967040 }
  0x25   :  { %257 = dma.done.wait [#allocation6], 128  }
  0x26   :  { %258 = vsyncadd [#allocation6], 4294967168  ;;  %v44_v0 = vlaneseq  ;;  %v265_v1 = vmov 1966171168   ;;  %v266_v6 = vmov 1983009808  }
  0x27   :  { %v42_v2 = vunpack.c.l.s4 %v265_v1  ;;  %v126_v7 = vunpack.c.l.s4 %v266_v6  ;;  %v38_v8 = vld [vmem:[#allocation5] sm:$0xff]  ;;  %v121_v40 = vld [vmem:[#allocation2] sm:$0xff]  ;;  %vm161_vm0 = vcmask 261120   ;;  %v122_v43 = vld [vmem:[#allocation2 + $0x8] sm:$0xff]  ;;  %s267_s1 = smov [#allocation7]  }
  0x28   :  { %v45_v3 = vshrl.u32 %v44_v0, 7  ;;  %v40_v11 = vcombine.high %v38_v8, %v38_v8  ;;  %s169_s6 = sshll.u32 %s267_s1, 4  ;;  %s170_s6 = int_to_ptr.vmem [resolvable:$true] %s169_s6 }
  0x29   :  { %v43_v4 = vunpack.c.0.s8 %v42_v2  ;;  %v127_v12 = vunpack.c.0.s8 %v126_v7  ;;  %s233_s7 = scalar_lea.vmem %s170_s6, 256  ;;  %p238_p3 = scmp.lt.s32.totalorder %s170_s6, %s170_s6 }
  0x2a   :  { %v91_v10 = vsub.s32 0, %v45_v3  ;;  %p234_p2 = scmp.ne.s32.totalorder %s170_s6, %s233_s7  ;;  %p239_p4 = scmp.lt.s32.totalorder %s233_s7, %s233_s7 }
  0x2b   :  { %v46_v5 = vsub.s32 %v43_v4, %v45_v3  ;;  %v130_v20 = vsub.s32 %v127_v12, %v45_v3 }
  0x2c   :  { %p240_p5 = por %p239_p4, %p238_p3 }
  0x2d   :  { %v47_v9 = vrot.slane %v38_v8, %v46_v5  ;;  %v54_v15 = vrot.slane %v40_v11, %v46_v5 }
  0x2e   :  { %p241_p6 = pnand %p240_p5, %p234_p2 }
  0x2f   :  { %v55_v13 = vcombine.high %v47_v9, %v47_v9  ;;  %v63_v14 = vrot.slane %v47_v9, %v46_v5  ;;  %v56_v19 = vcombine.high %v54_v15, %v54_v15  ;;  %v70_v21 = vrot.slane %v54_v15, %v46_v5 }
  0x31   :  { %v77_v16 = vrot.slane %v55_v13, %v46_v5  ;;  %v85_v17 = vcombine.high %v63_v14, %v63_v14  ;;  %v92_v18 = vrot.slane %v63_v14, %v91_v10  ;;  %v84_v25 = vrot.slane %v56_v19, %v46_v5 }
  0x32   :  { %v86_v26 = vcombine.high %v70_v21, %v70_v21  ;;  %v108_v27 = vrot.slane %v70_v21, %v91_v10 }
  0x33   :  { %v87_v22 = vcombine.high %v77_v16, %v77_v16  ;;  %v96_v23 = vrot.slane %v77_v16, %v91_v10  ;;  %v100_v24 = vrot.slane %v85_v17, %v91_v10  ;;  %v88_v30 = vcombine.high %v84_v25, %v84_v25 }
  0x34   :  { %v112_v31 = vrot.slane %v84_v25, %v91_v10  ;;  %v116_v32 = vrot.slane %v86_v26, %v91_v10 }
  0x35   :  { %v104_v28 = vrot.slane %v87_v22, %v91_v10  ;;  %v123_v29 = vcombine.low %v92_v18, %v96_v23  ;;  %v120_v35 = vrot.slane %v88_v30, %v91_v10 }
  0x36   :  { %v140_v36 = vcombine.low %v108_v27, %v112_v31 }
  0x37   :  { %v124_v33 = vcombine.low %v100_v24, %v104_v28  ;;  %v131_v34 = vrot.slane %v123_v29, %v130_v20  ;;  %v141_v38 = vcombine.low %v116_v32, %v120_v35 }
  0x38   :  { %v148_v39 = vrot.slane %v140_v36, %v130_v20 }
  0x39   :  { %v138_v37 = vrot.slane %v124_v33, %v130_v20  ;;  %v155_v42 = vrot.slane %v141_v38, %v130_v20 }
  0x3b   :  { %v139_v41 = vcombine.low %v131_v34, %v138_v37  ;;  %v156_v45 = vcombine.low %v148_v39, %v155_v42 }
  0x3d   :  { %v159_v44 = vadd.f32 %v139_v41, %v121_v40  ;;  %v160_v46 = vadd.f32 %v156_v45, %v122_v43 }
  0x3f   :  { %162 = vst.msk [vmem:[#allocation7] sm:$0xff] %vm161_vm0, %v159_v44  ;;  %163 = vst.msk [vmem:[#allocation7 + $0x8] sm:$0xff] %vm161_vm0, %v160_v46 }
  0x40   :  { %244 = shalt.err (!%p241_p6)
}
  0x41   :  { %s245_s10 = scalar_lea.hbm %s327_s2, 256 }
  0x42   :  { %p246_p7 = scmp.ne.s32.totalorder %s327_s2, %s245_s10  ;;  %p249_p8 = scmp.lt.u32.totalorder %s245_s10, %s327_s2 }
  0x44   :  { %p251_p9 = pnand %p249_p8, %p246_p7 }
  0x46   :  { %254 = shalt.err (!%p251_p9)
}
  0x47   :  { %175 = dma.vmem_to_hbm [thread:$0]  %s170_s6, 256, %s327_s2, [#allocation4], %s262_s19, %s262_s19, %s263_s20  }
  0x48   :  { %259 = dma.done.wait [#allocation4], 256  }
  0x49   :  { %260 = vsyncadd [#allocation4], 4294967040 }
  0x4a   :  { %179 = vsyncpa [#allocation3], 1 }
  0x4b   :  { %180 = vsyncpa [#allocation6], 1 }
  0x4c   :  { %181 = vsyncpa [#allocation4], 1 }

</bundles_post_ra>
